<compile_context>
chip_gen: v6e
topology: v6e:2x2x1
jax: 0.10.0
libtpu: 0.0.40
codegen_flags: <defaults>
</compile_context>

<pallas_src>
import functools

import jax
import jax.numpy as jnp
from jax.experimental import pallas as pl
from jax.experimental.pallas import tpu as pltpu


def _lstm_encoder_kernel(tok_ref, gt_ref, whh_ref, wlin_ref, blin_ref, out_ref):
    """tok_ref:  (B, T)  int32  token ids, scalar-prefetched into SMEM
       gt_ref:   (V, 4H) f32    embedding @ W_ih^T, g-columns pre-scaled by 2
       whh_ref:  (H, 4H) bf16   W_hh^T, g-columns pre-scaled by 2
       wlin_ref: (H, Lp) bf16   W_lin^T, zero-padded to 128 lanes
       blin_ref: (1, Lp) f32    b_lin, zero-padded
       out_ref:  (Bb, Lp) f32   lane-dense padded output slab."""
    Bb = out_ref.shape[0]
    H = whh_ref.shape[0]
    T = tok_ref.shape[1]
    b0 = pl.program_id(0) * Bb            # global batch offset of this block

    h = jnp.zeros((Bb, H), jnp.float32)
    c = jnp.zeros((Bb, H), jnp.float32)

    # Static unroll (T is tiny): the whole dependence chain is visible to the
    # scheduler and the token-row gathers (independent of h/c) hide under the
    # recurrence.
    # TODO(synk): for T >~ 32-64 switch to lax.fori_loop with partial unroll to
    # bound vreg live ranges.
    for t in range(T):
        # In-kernel gather of the pre-folded input-gate contributions
        # (embedding lookup + x @ W_ih^T collapsed into one table row / token).
        rows = [gt_ref[pl.ds(tok_ref[b0 + b, t], 1), :] for b in range(Bb)]
        gx_t = rows[0] if Bb == 1 else jnp.concatenate(rows, axis=0)

        # Only this matmul sits on the serial critical path; bf16 operands with
        # f32 accumulation keep it a single MXU pass on all generations.
        # TODO(synk): hold the loop-invariant W_hh in the MXU weight registers
        # across steps (pltpu.matmul_push_rhs / matmul_acc_lhs / matmul_pop)
        # instead of re-pushing the RHS every iteration.
        gates = gx_t + jnp.dot(h.astype(jnp.bfloat16), whh_ref[...],
                               preferred_element_type=jnp.float32)

        # Single whole-vreg EUP pass; tanh(g_pre) recovered from the
        # 2x-prescaled g columns via tanh(x) = 2*sigmoid(2x) - 1.
        sig = jax.nn.sigmoid(gates)
        i_g = sig[:, 0:H]
        f_g = sig[:, H:2 * H]
        g_g = 2.0 * sig[:, 2 * H:3 * H] - 1.0
        o_g = sig[:, 3 * H:4 * H]
        c = f_g * c + i_g * g_g
        h = o_g * jnp.tanh(c)

    # Final linear layer on the last hidden state; lane-dense 128-wide store.
    out_ref[...] = (jnp.dot(h.astype(jnp.bfloat16), wlin_ref[...],
                            preferred_element_type=jnp.float32)
                    + blin_ref[...])


def prepare_encoder_params(embedding, w_ih, w_hh, w_lin, b_lin):
    """Weight-only preprocessing. Cache the result across forward calls."""
    H = w_hh.shape[1]
    L = w_lin.shape[0]
    Lp = ((L + 127) // 128) * 128

    emb = jnp.asarray(embedding, jnp.float32)
    w_ih = jnp.asarray(w_ih, jnp.float32)
    # Fold W_ih into the embedding table: exact because the LSTM input path is
    # linear and bias-free (the zeroed padding_idx row stays zero).
    gate_table = emb @ w_ih.T                                   # (V, 4H) f32
    # Pre-scale the g-gate pre-activation by 2 (tanh(x) = 2*sigmoid(2x) - 1).
    gate_table = gate_table.at[:, 2 * H:3 * H].multiply(2.0)

    whh_t = jnp.asarray(w_hh, jnp.float32).T                    # (H, 4H)
    whh_t = whh_t.at[:, 2 * H:3 * H].multiply(2.0)              # exact (x2)
    whh_t = whh_t.astype(jnp.bfloat16)                          # MXU operand

    wlin_t = jnp.zeros((H, Lp), jnp.float32).at[:, :L].set(
        jnp.asarray(w_lin, jnp.float32).T).astype(jnp.bfloat16)  # (H, Lp)
    blin_p = jnp.zeros((1, Lp), jnp.float32).at[0, :L].set(
        jnp.asarray(b_lin, jnp.float32))                         # (1, Lp)
    return gate_table, whh_t, wlin_t, blin_p, L


@functools.partial(jax.jit, static_argnames=("latent_channels",))
def encoder_lstm_forward(tokens, gate_table, whh_t, wlin_t, blin_p,
                         latent_channels):
    """tokens: (B, T) int32. Returns (B, latent_channels) float32."""
    tokens = tokens.astype(jnp.int32)
    B, _ = tokens.shape
    V, fourH = gate_table.shape
    H = whh_t.shape[0]
    Lp = wlin_t.shape[1]

    # Batch tiling: one block at small B; split into >=2 "parallel" grid steps
    # (v7x dual-TC) only once B is large enough for the split to pay off.
    # TODO(synk): for very large B, cap block_b at 128 (v5e) / 256 (v6e, v7x).
    if B >= 16 and B % 16 == 0 and B // 2 <= 128:
        block_b = B // 2
    else:
        block_b = B
    grid = (B // block_b,)

    out_p = pl.pallas_call(
        _lstm_encoder_kernel,
        out_shape=jax.ShapeDtypeStruct((B, Lp), jnp.float32),
        grid_spec=pltpu.PrefetchScalarGridSpec(
            num_scalar_prefetch=1,                  # tokens -> SMEM
            grid=grid,
            in_specs=[
                pl.BlockSpec((V, fourH), lambda b, tok: (0, 0)),
                pl.BlockSpec((H, fourH), lambda b, tok: (0, 0)),
                pl.BlockSpec((H, Lp), lambda b, tok: (0, 0)),
                pl.BlockSpec((1, Lp), lambda b, tok: (0, 0)),
            ],
            out_specs=pl.BlockSpec((block_b, Lp), lambda b, tok: (b, 0)),
        ),
        compiler_params=pltpu.CompilerParams(
            dimension_semantics=("parallel",)),
    )(tokens, gate_table, whh_t, wlin_t, blin_p)

    return out_p[:, :latent_channels]


def _reference_forward(tokens, embedding, w_ih, w_hh, w_lin, b_lin):
    """Pure-JAX f32 reference mirroring PyTorch nn.LSTM (no bias) + nn.Linear."""
    H = w_hh.shape[1]
    z = jnp.take(embedding, tokens, axis=0).astype(jnp.float32)  # (B, T, E)
    B, T, _ = z.shape
    h = jnp.zeros((B, H), jnp.float32)
    c = jnp.zeros((B, H), jnp.float32)
    for t in range(T):
        gates = z[:, t, :] @ w_ih.T + h @ w_hh.T
        i = jax.nn.sigmoid(gates[:, 0:H])
        f = jax.nn.sigmoid(gates[:, H:2 * H])
        g = jnp.tanh(gates[:, 2 * H:3 * H])
        o = jax.nn.sigmoid(gates[:, 3 * H:4 * H])
        c = f * c + i * g
        h = o * jnp.tanh(c)
    return h @ w_lin.T + b_lin


if __name__ == "__main__":
    # Module hyperparameters (small, consistent with the PyTorch __init__).
    embedding_dim = 16      # E
    num_embeddings = 20     # V
    padding_idx = 0
    hidden_channels = 32    # H
    latent_channels = 8     # L
    B, T = 2, 8

    key = jax.random.PRNGKey(0)
    k_emb, k_ih, k_hh, k_lw, k_lb, k_tok = jax.random.split(key, 6)

    embedding = jax.random.normal(k_emb, (num_embeddings, embedding_dim),
                                  jnp.float32)
    embedding = embedding.at[padding_idx].set(0.0)   # padding_idx row zeroed

    bound = 1.0 / jnp.sqrt(hidden_channels)
    w_ih = jax.random.uniform(k_ih, (4 * hidden_channels, embedding_dim),
                              jnp.float32, -bound, bound)   # gate order i,f,g,o
    w_hh = jax.random.uniform(k_hh, (4 * hidden_channels, hidden_channels),
                              jnp.float32, -bound, bound)
    lin_bound = 1.0 / jnp.sqrt(hidden_channels)
    w_lin = jax.random.uniform(k_lw, (latent_channels, hidden_channels),
                               jnp.float32, -lin_bound, lin_bound)
    b_lin = jax.random.uniform(k_lb, (latent_channels,),
                               jnp.float32, -lin_bound, lin_bound)

    tokens = jax.random.randint(k_tok, (B, T), 0, num_embeddings, jnp.int32)

    # Weight-only prep (cacheable across calls).
    gate_table, whh_t, wlin_t, blin_p, L = prepare_encoder_params(
        embedding, w_ih, w_hh, w_lin, b_lin)

    out = encoder_lstm_forward(tokens, gate_table, whh_t, wlin_t, blin_p,
                               latent_channels=L)
    out = jax.block_until_ready(out)

    ref = _reference_forward(tokens, embedding, w_ih, w_hh, w_lin, b_lin)
    assert out.shape == (B, latent_channels)
    # bf16 MXU operands (f32 accumulation) -> relaxed tolerance vs f32 reference.
    assert jnp.allclose(out, ref, atol=2e-2, rtol=2e-2), (out, ref)

    print("KERNEL_OK")
</pallas_src>

<mosaic_0001>
module attributes {stable_mosaic.version = 11 : i64} {
  func.func @_lstm_encoder_kernel(%arg0: i32, %arg1: memref<2x8xi32, #tpu.memory_space<smem>>, %arg2: memref<20x128xf32, #tpu.memory_space<vmem>>, %arg3: memref<32x128xbf16, #tpu.memory_space<vmem>>, %arg4: memref<32x128xbf16, #tpu.memory_space<vmem>>, %arg5: memref<1x128xf32, #tpu.memory_space<vmem>>, %arg6: memref<2x128xf32, #tpu.memory_space<vmem>>) attributes {dimension_semantics = [#tpu.dimension_semantics<parallel>], iteration_bounds = array<i64: 1>, scalar_prefetch = 1 : i64, scratch_operands = 0 : i64, tpu.core_type = #tpu.core_type<tc>, window_params = [{pipeline_mode = #tpu.pipeline_mode<synchronous>, transform_indices = @transform_0, window_bounds = array<i64: 20, 128>}, {pipeline_mode = #tpu.pipeline_mode<synchronous>, transform_indices = @transform_1, window_bounds = array<i64: 32, 128>}, {pipeline_mode = #tpu.pipeline_mode<synchronous>, transform_indices = @transform_2, window_bounds = array<i64: 32, 128>}, {pipeline_mode = #tpu.pipeline_mode<synchronous>, transform_indices = @transform_3, window_bounds = array<i64: 1, 128>}, {transform_indices = @transform_4, window_bounds = array<i64: 2, 128>}]} {
    %c2_i32 = arith.constant 2 : i32
    %0 = arith.muli %arg0, %c2_i32 : i32
    %cst = arith.constant 0.000000e+00 : f32
    %1 = vector.broadcast %cst : f32 to vector<2x32xf32>
    %cst_0 = arith.constant 0.000000e+00 : f32
    %2 = vector.broadcast %cst_0 : f32 to vector<2x32xf32>
    %c0_i32 = arith.constant 0 : i32
    %3 = arith.addi %0, %c0_i32 : i32
    %4 = arith.index_cast %3 : i32 to index
    %c0 = arith.constant 0 : index
    %5 = memref.load %arg1[%4, %c0] : memref<2x8xi32, #tpu.memory_space<smem>>
    %6 = arith.index_cast %5 : i32 to index
    %c0_1 = arith.constant 0 : index
    %7 = vector.load %arg2[%6, %c0_1] : memref<20x128xf32, #tpu.memory_space<vmem>>, vector<1x128xf32>
    %c1_i32 = arith.constant 1 : i32
    %8 = arith.addi %0, %c1_i32 : i32
    %9 = arith.index_cast %8 : i32 to index
    %c0_2 = arith.constant 0 : index
    %10 = memref.load %arg1[%9, %c0_2] : memref<2x8xi32, #tpu.memory_space<smem>>
    %11 = arith.index_cast %10 : i32 to index
    %c0_3 = arith.constant 0 : index
    %12 = vector.load %arg2[%11, %c0_3] : memref<20x128xf32, #tpu.memory_space<vmem>>, vector<1x128xf32>
    %13 = tpu.concatenate %7, %12 in 0 : vector<1x128xf32>, vector<1x128xf32> -> vector<2x128xf32>
    %14 = arith.truncf %1 : vector<2x32xf32> to vector<2x32xbf16>
    %c0_4 = arith.constant 0 : index
    %c0_5 = arith.constant 0 : index
    %15 = vector.load %arg3[%c0_4, %c0_5] : memref<32x128xbf16, #tpu.memory_space<vmem>>, vector<32x128xbf16>
    %cst_6 = arith.constant dense<0.000000e+00> : vector<2x128xf32>
    %16 = tpu.matmul %14, %15, %cst_6 {dimension_numbers = #tpu.dot_dimension_numbers<[1], [0], [0], [1], [0, 0, 1, 1], [], []>} : vector<2x32xbf16>, vector<32x128xbf16>, vector<2x128xf32> -> vector<2x128xf32>
    %17 = arith.addf %13, %16 : vector<2x128xf32>
    %18 = arith.negf %17 : vector<2x128xf32>
    %19 = math.exp %18 : vector<2x128xf32>
    %cst_7 = arith.constant 1.000000e+00 : f32
    %20 = vector.broadcast %cst_7 : f32 to vector<2x128xf32>
    %21 = arith.addf %20, %19 : vector<2x128xf32>
    %22 = arith.divf %20, %21 : vector<2x128xf32>
    %23 = vector.extract_strided_slice %22 {offsets = [0, 0], sizes = [2, 32], strides = [1, 1]} : vector<2x128xf32> to vector<2x32xf32>
    %24 = vector.extract_strided_slice %22 {offsets = [0, 32], sizes = [2, 32], strides = [1, 1]} : vector<2x128xf32> to vector<2x32xf32>
    %25 = vector.extract_strided_slice %22 {offsets = [0, 64], sizes = [2, 32], strides = [1, 1]} : vector<2x128xf32> to vector<2x32xf32>
    %cst_8 = arith.constant 2.000000e+00 : f32
    %26 = vector.broadcast %cst_8 : f32 to vector<2x32xf32>
    %27 = arith.mulf %26, %25 : vector<2x32xf32>
    %cst_9 = arith.constant 1.000000e+00 : f32
    %28 = vector.broadcast %cst_9 : f32 to vector<2x32xf32>
    %29 = arith.subf %27, %28 : vector<2x32xf32>
    %30 = vector.extract_strided_slice %22 {offsets = [0, 96], sizes = [2, 32], strides = [1, 1]} : vector<2x128xf32> to vector<2x32xf32>
    %31 = arith.mulf %24, %2 : vector<2x32xf32>
    %32 = arith.mulf %23, %29 : vector<2x32xf32>
    %33 = arith.addf %31, %32 : vector<2x32xf32>
    %34 = math.tanh %33 : vector<2x32xf32>
    %35 = arith.mulf %30, %34 : vector<2x32xf32>
    %c0_i32_10 = arith.constant 0 : i32
    %36 = arith.addi %0, %c0_i32_10 : i32
    %37 = arith.index_cast %36 : i32 to index
    %c1 = arith.constant 1 : index
    %38 = memref.load %arg1[%37, %c1] : memref<2x8xi32, #tpu.memory_space<smem>>
    %39 = arith.index_cast %38 : i32 to index
    %c0_11 = arith.constant 0 : index
    %40 = vector.load %arg2[%39, %c0_11] : memref<20x128xf32, #tpu.memory_space<vmem>>, vector<1x128xf32>
    %c1_i32_12 = arith.constant 1 : i32
    %41 = arith.addi %0, %c1_i32_12 : i32
    %42 = arith.index_cast %41 : i32 to index
    %c1_13 = arith.constant 1 : index
    %43 = memref.load %arg1[%42, %c1_13] : memref<2x8xi32, #tpu.memory_space<smem>>
    %44 = arith.index_cast %43 : i32 to index
    %c0_14 = arith.constant 0 : index
    %45 = vector.load %arg2[%44, %c0_14] : memref<20x128xf32, #tpu.memory_space<vmem>>, vector<1x128xf32>
    %46 = tpu.concatenate %40, %45 in 0 : vector<1x128xf32>, vector<1x128xf32> -> vector<2x128xf32>
    %47 = arith.truncf %35 : vector<2x32xf32> to vector<2x32xbf16>
    %c0_15 = arith.constant 0 : index
    %c0_16 = arith.constant 0 : index
    %48 = vector.load %arg3[%c0_15, %c0_16] : memref<32x128xbf16, #tpu.memory_space<vmem>>, vector<32x128xbf16>
    %cst_17 = arith.constant dense<0.000000e+00> : vector<2x128xf32>
    %49 = tpu.matmul %47, %48, %cst_17 {dimension_numbers = #tpu.dot_dimension_numbers<[1], [0], [0], [1], [0, 0, 1, 1], [], []>} : vector<2x32xbf16>, vector<32x128xbf16>, vector<2x128xf32> -> vector<2x128xf32>
    %50 = arith.addf %46, %49 : vector<2x128xf32>
    %51 = arith.negf %50 : vector<2x128xf32>
    %52 = math.exp %51 : vector<2x128xf32>
    %cst_18 = arith.constant 1.000000e+00 : f32
    %53 = vector.broadcast %cst_18 : f32 to vector<2x128xf32>
    %54 = arith.addf %53, %52 : vector<2x128xf32>
    %55 = arith.divf %53, %54 : vector<2x128xf32>
    %56 = vector.extract_strided_slice %55 {offsets = [0, 0], sizes = [2, 32], strides = [1, 1]} : vector<2x128xf32> to vector<2x32xf32>
    %57 = vector.extract_strided_slice %55 {offsets = [0, 32], sizes = [2, 32], strides = [1, 1]} : vector<2x128xf32> to vector<2x32xf32>
    %58 = vector.extract_strided_slice %55 {offsets = [0, 64], sizes = [2, 32], strides = [1, 1]} : vector<2x128xf32> to vector<2x32xf32>
    %cst_19 = arith.constant 2.000000e+00 : f32
    %59 = vector.broadcast %cst_19 : f32 to vector<2x32xf32>
    %60 = arith.mulf %59, %58 : vector<2x32xf32>
    %cst_20 = arith.constant 1.000000e+00 : f32
    %61 = vector.broadcast %cst_20 : f32 to vector<2x32xf32>
    %62 = arith.subf %60, %61 : vector<2x32xf32>
    %63 = vector.extract_strided_slice %55 {offsets = [0, 96], sizes = [2, 32], strides = [1, 1]} : vector<2x128xf32> to vector<2x32xf32>
    %64 = arith.mulf %57, %33 : vector<2x32xf32>
    %65 = arith.mulf %56, %62 : vector<2x32xf32>
    %66 = arith.addf %64, %65 : vector<2x32xf32>
    %67 = math.tanh %66 : vector<2x32xf32>
    %68 = arith.mulf %63, %67 : vector<2x32xf32>
    %c0_i32_21 = arith.constant 0 : i32
    %69 = arith.addi %0, %c0_i32_21 : i32
    %70 = arith.index_cast %69 : i32 to index
    %c2 = arith.constant 2 : index
    %71 = memref.load %arg1[%70, %c2] : memref<2x8xi32, #tpu.memory_space<smem>>
    %72 = arith.index_cast %71 : i32 to index
    %c0_22 = arith.constant 0 : index
    %73 = vector.load %arg2[%72, %c0_22] : memref<20x128xf32, #tpu.memory_space<vmem>>, vector<1x128xf32>
    %c1_i32_23 = arith.constant 1 : i32
    %74 = arith.addi %0, %c1_i32_23 : i32
    %75 = arith.index_cast %74 : i32 to index
    %c2_24 = arith.constant 2 : index
    %76 = memref.load %arg1[%75, %c2_24] : memref<2x8xi32, #tpu.memory_space<smem>>
    %77 = arith.index_cast %76 : i32 to index
    %c0_25 = arith.constant 0 : index
    %78 = vector.load %arg2[%77, %c0_25] : memref<20x128xf32, #tpu.memory_space<vmem>>, vector<1x128xf32>
    %79 = tpu.concatenate %73, %78 in 0 : vector<1x128xf32>, vector<1x128xf32> -> vector<2x128xf32>
    %80 = arith.truncf %68 : vector<2x32xf32> to vector<2x32xbf16>
    %c0_26 = arith.constant 0 : index
    %c0_27 = arith.constant 0 : index
    %81 = vector.load %arg3[%c0_26, %c0_27] : memref<32x128xbf16, #tpu.memory_space<vmem>>, vector<32x128xbf16>
    %cst_28 = arith.constant dense<0.000000e+00> : vector<2x128xf32>
    %82 = tpu.matmul %80, %81, %cst_28 {dimension_numbers = #tpu.dot_dimension_numbers<[1], [0], [0], [1], [0, 0, 1, 1], [], []>} : vector<2x32xbf16>, vector<32x128xbf16>, vector<2x128xf32> -> vector<2x128xf32>
    %83 = arith.addf %79, %82 : vector<2x128xf32>
    %84 = arith.negf %83 : vector<2x128xf32>
    %85 = math.exp %84 : vector<2x128xf32>
    %cst_29 = arith.constant 1.000000e+00 : f32
    %86 = vector.broadcast %cst_29 : f32 to vector<2x128xf32>
    %87 = arith.addf %86, %85 : vector<2x128xf32>
    %88 = arith.divf %86, %87 : vector<2x128xf32>
    %89 = vector.extract_strided_slice %88 {offsets = [0, 0], sizes = [2, 32], strides = [1, 1]} : vector<2x128xf32> to vector<2x32xf32>
    %90 = vector.extract_strided_slice %88 {offsets = [0, 32], sizes = [2, 32], strides = [1, 1]} : vector<2x128xf32> to vector<2x32xf32>
    %91 = vector.extract_strided_slice %88 {offsets = [0, 64], sizes = [2, 32], strides = [1, 1]} : vector<2x128xf32> to vector<2x32xf32>
    %cst_30 = arith.constant 2.000000e+00 : f32
    %92 = vector.broadcast %cst_30 : f32 to vector<2x32xf32>
    %93 = arith.mulf %92, %91 : vector<2x32xf32>
    %cst_31 = arith.constant 1.000000e+00 : f32
    %94 = vector.broadcast %cst_31 : f32 to vector<2x32xf32>
    %95 = arith.subf %93, %94 : vector<2x32xf32>
    %96 = vector.extract_strided_slice %88 {offsets = [0, 96], sizes = [2, 32], strides = [1, 1]} : vector<2x128xf32> to vector<2x32xf32>
    %97 = arith.mulf %90, %66 : vector<2x32xf32>
    %98 = arith.mulf %89, %95 : vector<2x32xf32>
    %99 = arith.addf %97, %98 : vector<2x32xf32>
    %100 = math.tanh %99 : vector<2x32xf32>
    %101 = arith.mulf %96, %100 : vector<2x32xf32>
    %c0_i32_32 = arith.constant 0 : i32
    %102 = arith.addi %0, %c0_i32_32 : i32
    %103 = arith.index_cast %102 : i32 to index
    %c3 = arith.constant 3 : index
    %104 = memref.load %arg1[%103, %c3] : memref<2x8xi32, #tpu.memory_space<smem>>
    %105 = arith.index_cast %104 : i32 to index
    %c0_33 = arith.constant 0 : index
    %106 = vector.load %arg2[%105, %c0_33] : memref<20x128xf32, #tpu.memory_space<vmem>>, vector<1x128xf32>
    %c1_i32_34 = arith.constant 1 : i32
    %107 = arith.addi %0, %c1_i32_34 : i32
    %108 = arith.index_cast %107 : i32 to index
    %c3_35 = arith.constant 3 : index
    %109 = memref.load %arg1[%108, %c3_35] : memref<2x8xi32, #tpu.memory_space<smem>>
    %110 = arith.index_cast %109 : i32 to index
    %c0_36 = arith.constant 0 : index
    %111 = vector.load %arg2[%110, %c0_36] : memref<20x128xf32, #tpu.memory_space<vmem>>, vector<1x128xf32>
    %112 = tpu.concatenate %106, %111 in 0 : vector<1x128xf32>, vector<1x128xf32> -> vector<2x128xf32>
    %113 = arith.truncf %101 : vector<2x32xf32> to vector<2x32xbf16>
    %c0_37 = arith.constant 0 : index
    %c0_38 = arith.constant 0 : index
    %114 = vector.load %arg3[%c0_37, %c0_38] : memref<32x128xbf16, #tpu.memory_space<vmem>>, vector<32x128xbf16>
    %cst_39 = arith.constant dense<0.000000e+00> : vector<2x128xf32>
    %115 = tpu.matmul %113, %114, %cst_39 {dimension_numbers = #tpu.dot_dimension_numbers<[1], [0], [0], [1], [0, 0, 1, 1], [], []>} : vector<2x32xbf16>, vector<32x128xbf16>, vector<2x128xf32> -> vector<2x128xf32>
    %116 = arith.addf %112, %115 : vector<2x128xf32>
    %117 = arith.negf %116 : vector<2x128xf32>
    %118 = math.exp %117 : vector<2x128xf32>
    %cst_40 = arith.constant 1.000000e+00 : f32
    %119 = vector.broadcast %cst_40 : f32 to vector<2x128xf32>
    %120 = arith.addf %119, %118 : vector<2x128xf32>
    %121 = arith.divf %119, %120 : vector<2x128xf32>
    %122 = vector.extract_strided_slice %121 {offsets = [0, 0], sizes = [2, 32], strides = [1, 1]} : vector<2x128xf32> to vector<2x32xf32>
    %123 = vector.extract_strided_slice %121 {offsets = [0, 32], sizes = [2, 32], strides = [1, 1]} : vector<2x128xf32> to vector<2x32xf32>
    %124 = vector.extract_strided_slice %121 {offsets = [0, 64], sizes = [2, 32], strides = [1, 1]} : vector<2x128xf32> to vector<2x32xf32>
    %cst_41 = arith.constant 2.000000e+00 : f32
    %125 = vector.broadcast %cst_41 : f32 to vector<2x32xf32>
    %126 = arith.mulf %125, %124 : vector<2x32xf32>
    %cst_42 = arith.constant 1.000000e+00 : f32
    %127 = vector.broadcast %cst_42 : f32 to vector<2x32xf32>
    %128 = arith.subf %126, %127 : vector<2x32xf32>
    %129 = vector.extract_strided_slice %121 {offsets = [0, 96], sizes = [2, 32], strides = [1, 1]} : vector<2x128xf32> to vector<2x32xf32>
    %130 = arith.mulf %123, %99 : vector<2x32xf32>
    %131 = arith.mulf %122, %128 : vector<2x32xf32>
    %132 = arith.addf %130, %131 : vector<2x32xf32>
    %133 = math.tanh %132 : vector<2x32xf32>
    %134 = arith.mulf %129, %133 : vector<2x32xf32>
    %c0_i32_43 = arith.constant 0 : i32
    %135 = arith.addi %0, %c0_i32_43 : i32
    %136 = arith.index_cast %135 : i32 to index
    %c4 = arith.constant 4 : index
    %137 = memref.load %arg1[%136, %c4] : memref<2x8xi32, #tpu.memory_space<smem>>
    %138 = arith.index_cast %137 : i32 to index
    %c0_44 = arith.constant 0 : index
    %139 = vector.load %arg2[%138, %c0_44] : memref<20x128xf32, #tpu.memory_space<vmem>>, vector<1x128xf32>
    %c1_i32_45 = arith.constant 1 : i32
    %140 = arith.addi %0, %c1_i32_45 : i32
    %141 = arith.index_cast %140 : i32 to index
    %c4_46 = arith.constant 4 : index
    %142 = memref.load %arg1[%141, %c4_46] : memref<2x8xi32, #tpu.memory_space<smem>>
    %143 = arith.index_cast %142 : i32 to index
    %c0_47 = arith.constant 0 : index
    %144 = vector.load %arg2[%143, %c0_47] : memref<20x128xf32, #tpu.memory_space<vmem>>, vector<1x128xf32>
    %145 = tpu.concatenate %139, %144 in 0 : vector<1x128xf32>, vector<1x128xf32> -> vector<2x128xf32>
    %146 = arith.truncf %134 : vector<2x32xf32> to vector<2x32xbf16>
    %c0_48 = arith.constant 0 : index
    %c0_49 = arith.constant 0 : index
    %147 = vector.load %arg3[%c0_48, %c0_49] : memref<32x128xbf16, #tpu.memory_space<vmem>>, vector<32x128xbf16>
    %cst_50 = arith.constant dense<0.000000e+00> : vector<2x128xf32>
    %148 = tpu.matmul %146, %147, %cst_50 {dimension_numbers = #tpu.dot_dimension_numbers<[1], [0], [0], [1], [0, 0, 1, 1], [], []>} : vector<2x32xbf16>, vector<32x128xbf16>, vector<2x128xf32> -> vector<2x128xf32>
    %149 = arith.addf %145, %148 : vector<2x128xf32>
    %150 = arith.negf %149 : vector<2x128xf32>
    %151 = math.exp %150 : vector<2x128xf32>
    %cst_51 = arith.constant 1.000000e+00 : f32
    %152 = vector.broadcast %cst_51 : f32 to vector<2x128xf32>
    %153 = arith.addf %152, %151 : vector<2x128xf32>
    %154 = arith.divf %152, %153 : vector<2x128xf32>
    %155 = vector.extract_strided_slice %154 {offsets = [0, 0], sizes = [2, 32], strides = [1, 1]} : vector<2x128xf32> to vector<2x32xf32>
    %156 = vector.extract_strided_slice %154 {offsets = [0, 32], sizes = [2, 32], strides = [1, 1]} : vector<2x128xf32> to vector<2x32xf32>
    %157 = vector.extract_strided_slice %154 {offsets = [0, 64], sizes = [2, 32], strides = [1, 1]} : vector<2x128xf32> to vector<2x32xf32>
    %cst_52 = arith.constant 2.000000e+00 : f32
    %158 = vector.broadcast %cst_52 : f32 to vector<2x32xf32>
    %159 = arith.mulf %158, %157 : vector<2x32xf32>
    %cst_53 = arith.constant 1.000000e+00 : f32
    %160 = vector.broadcast %cst_53 : f32 to vector<2x32xf32>
    %161 = arith.subf %159, %160 : vector<2x32xf32>
    %162 = vector.extract_strided_slice %154 {offsets = [0, 96], sizes = [2, 32], strides = [1, 1]} : vector<2x128xf32> to vector<2x32xf32>
    %163 = arith.mulf %156, %132 : vector<2x32xf32>
    %164 = arith.mulf %155, %161 : vector<2x32xf32>
    %165 = arith.addf %163, %164 : vector<2x32xf32>
    %166 = math.tanh %165 : vector<2x32xf32>
    %167 = arith.mulf %162, %166 : vector<2x32xf32>
    %c0_i32_54 = arith.constant 0 : i32
    %168 = arith.addi %0, %c0_i32_54 : i32
    %169 = arith.index_cast %168 : i32 to index
    %c5 = arith.constant 5 : index
    %170 = memref.load %arg1[%169, %c5] : memref<2x8xi32, #tpu.memory_space<smem>>
    %171 = arith.index_cast %170 : i32 to index
    %c0_55 = arith.constant 0 : index
    %172 = vector.load %arg2[%171, %c0_55] : memref<20x128xf32, #tpu.memory_space<vmem>>, vector<1x128xf32>
    %c1_i32_56 = arith.constant 1 : i32
    %173 = arith.addi %0, %c1_i32_56 : i32
    %174 = arith.index_cast %173 : i32 to index
    %c5_57 = arith.constant 5 : index
    %175 = memref.load %arg1[%174, %c5_57] : memref<2x8xi32, #tpu.memory_space<smem>>
    %176 = arith.index_cast %175 : i32 to index
    %c0_58 = arith.constant 0 : index
    %177 = vector.load %arg2[%176, %c0_58] : memref<20x128xf32, #tpu.memory_space<vmem>>, vector<1x128xf32>
    %178 = tpu.concatenate %172, %177 in 0 : vector<1x128xf32>, vector<1x128xf32> -> vector<2x128xf32>
    %179 = arith.truncf %167 : vector<2x32xf32> to vector<2x32xbf16>
    %c0_59 = arith.constant 0 : index
    %c0_60 = arith.constant 0 : index
    %180 = vector.load %arg3[%c0_59, %c0_60] : memref<32x128xbf16, #tpu.memory_space<vmem>>, vector<32x128xbf16>
    %cst_61 = arith.constant dense<0.000000e+00> : vector<2x128xf32>
    %181 = tpu.matmul %179, %180, %cst_61 {dimension_numbers = #tpu.dot_dimension_numbers<[1], [0], [0], [1], [0, 0, 1, 1], [], []>} : vector<2x32xbf16>, vector<32x128xbf16>, vector<2x128xf32> -> vector<2x128xf32>
    %182 = arith.addf %178, %181 : vector<2x128xf32>
    %183 = arith.negf %182 : vector<2x128xf32>
    %184 = math.exp %183 : vector<2x128xf32>
    %cst_62 = arith.constant 1.000000e+00 : f32
    %185 = vector.broadcast %cst_62 : f32 to vector<2x128xf32>
    %186 = arith.addf %185, %184 : vector<2x128xf32>
    %187 = arith.divf %185, %186 : vector<2x128xf32>
    %188 = vector.extract_strided_slice %187 {offsets = [0, 0], sizes = [2, 32], strides = [1, 1]} : vector<2x128xf32> to vector<2x32xf32>
    %189 = vector.extract_strided_slice %187 {offsets = [0, 32], sizes = [2, 32], strides = [1, 1]} : vector<2x128xf32> to vector<2x32xf32>
    %190 = vector.extract_strided_slice %187 {offsets = [0, 64], sizes = [2, 32], strides = [1, 1]} : vector<2x128xf32> to vector<2x32xf32>
    %cst_63 = arith.constant 2.000000e+00 : f32
    %191 = vector.broadcast %cst_63 : f32 to vector<2x32xf32>
    %192 = arith.mulf %191, %190 : vector<2x32xf32>
    %cst_64 = arith.constant 1.000000e+00 : f32
    %193 = vector.broadcast %cst_64 : f32 to vector<2x32xf32>
    %194 = arith.subf %192, %193 : vector<2x32xf32>
    %195 = vector.extract_strided_slice %187 {offsets = [0, 96], sizes = [2, 32], strides = [1, 1]} : vector<2x128xf32> to vector<2x32xf32>
    %196 = arith.mulf %189, %165 : vector<2x32xf32>
    %197 = arith.mulf %188, %194 : vector<2x32xf32>
    %198 = arith.addf %196, %197 : vector<2x32xf32>
    %199 = math.tanh %198 : vector<2x32xf32>
    %200 = arith.mulf %195, %199 : vector<2x32xf32>
    %c0_i32_65 = arith.constant 0 : i32
    %201 = arith.addi %0, %c0_i32_65 : i32
    %202 = arith.index_cast %201 : i32 to index
    %c6 = arith.constant 6 : index
    %203 = memref.load %arg1[%202, %c6] : memref<2x8xi32, #tpu.memory_space<smem>>
    %204 = arith.index_cast %203 : i32 to index
    %c0_66 = arith.constant 0 : index
    %205 = vector.load %arg2[%204, %c0_66] : memref<20x128xf32, #tpu.memory_space<vmem>>, vector<1x128xf32>
    %c1_i32_67 = arith.constant 1 : i32
    %206 = arith.addi %0, %c1_i32_67 : i32
    %207 = arith.index_cast %206 : i32 to index
    %c6_68 = arith.constant 6 : index
    %208 = memref.load %arg1[%207, %c6_68] : memref<2x8xi32, #tpu.memory_space<smem>>
    %209 = arith.index_cast %208 : i32 to index
    %c0_69 = arith.constant 0 : index
    %210 = vector.load %arg2[%209, %c0_69] : memref<20x128xf32, #tpu.memory_space<vmem>>, vector<1x128xf32>
    %211 = tpu.concatenate %205, %210 in 0 : vector<1x128xf32>, vector<1x128xf32> -> vector<2x128xf32>
    %212 = arith.truncf %200 : vector<2x32xf32> to vector<2x32xbf16>
    %c0_70 = arith.constant 0 : index
    %c0_71 = arith.constant 0 : index
    %213 = vector.load %arg3[%c0_70, %c0_71] : memref<32x128xbf16, #tpu.memory_space<vmem>>, vector<32x128xbf16>
    %cst_72 = arith.constant dense<0.000000e+00> : vector<2x128xf32>
    %214 = tpu.matmul %212, %213, %cst_72 {dimension_numbers = #tpu.dot_dimension_numbers<[1], [0], [0], [1], [0, 0, 1, 1], [], []>} : vector<2x32xbf16>, vector<32x128xbf16>, vector<2x128xf32> -> vector<2x128xf32>
    %215 = arith.addf %211, %214 : vector<2x128xf32>
    %216 = arith.negf %215 : vector<2x128xf32>
    %217 = math.exp %216 : vector<2x128xf32>
    %cst_73 = arith.constant 1.000000e+00 : f32
    %218 = vector.broadcast %cst_73 : f32 to vector<2x128xf32>
    %219 = arith.addf %218, %217 : vector<2x128xf32>
    %220 = arith.divf %218, %219 : vector<2x128xf32>
    %221 = vector.extract_strided_slice %220 {offsets = [0, 0], sizes = [2, 32], strides = [1, 1]} : vector<2x128xf32> to vector<2x32xf32>
    %222 = vector.extract_strided_slice %220 {offsets = [0, 32], sizes = [2, 32], strides = [1, 1]} : vector<2x128xf32> to vector<2x32xf32>
    %223 = vector.extract_strided_slice %220 {offsets = [0, 64], sizes = [2, 32], strides = [1, 1]} : vector<2x128xf32> to vector<2x32xf32>
    %cst_74 = arith.constant 2.000000e+00 : f32
    %224 = vector.broadcast %cst_74 : f32 to vector<2x32xf32>
    %225 = arith.mulf %224, %223 : vector<2x32xf32>
    %cst_75 = arith.constant 1.000000e+00 : f32
    %226 = vector.broadcast %cst_75 : f32 to vector<2x32xf32>
    %227 = arith.subf %225, %226 : vector<2x32xf32>
    %228 = vector.extract_strided_slice %220 {offsets = [0, 96], sizes = [2, 32], strides = [1, 1]} : vector<2x128xf32> to vector<2x32xf32>
    %229 = arith.mulf %222, %198 : vector<2x32xf32>
    %230 = arith.mulf %221, %227 : vector<2x32xf32>
    %231 = arith.addf %229, %230 : vector<2x32xf32>
    %232 = math.tanh %231 : vector<2x32xf32>
    %233 = arith.mulf %228, %232 : vector<2x32xf32>
    %c0_i32_76 = arith.constant 0 : i32
    %234 = arith.addi %0, %c0_i32_76 : i32
    %235 = arith.index_cast %234 : i32 to index
    %c7 = arith.constant 7 : index
    %236 = memref.load %arg1[%235, %c7] : memref<2x8xi32, #tpu.memory_space<smem>>
    %237 = arith.index_cast %236 : i32 to index
    %c0_77 = arith.constant 0 : index
    %238 = vector.load %arg2[%237, %c0_77] : memref<20x128xf32, #tpu.memory_space<vmem>>, vector<1x128xf32>
    %c1_i32_78 = arith.constant 1 : i32
    %239 = arith.addi %0, %c1_i32_78 : i32
    %240 = arith.index_cast %239 : i32 to index
    %c7_79 = arith.constant 7 : index
    %241 = memref.load %arg1[%240, %c7_79] : memref<2x8xi32, #tpu.memory_space<smem>>
    %242 = arith.index_cast %241 : i32 to index
    %c0_80 = arith.constant 0 : index
    %243 = vector.load %arg2[%242, %c0_80] : memref<20x128xf32, #tpu.memory_space<vmem>>, vector<1x128xf32>
    %244 = tpu.concatenate %238, %243 in 0 : vector<1x128xf32>, vector<1x128xf32> -> vector<2x128xf32>
    %245 = arith.truncf %233 : vector<2x32xf32> to vector<2x32xbf16>
    %c0_81 = arith.constant 0 : index
    %c0_82 = arith.constant 0 : index
    %246 = vector.load %arg3[%c0_81, %c0_82] : memref<32x128xbf16, #tpu.memory_space<vmem>>, vector<32x128xbf16>
    %cst_83 = arith.constant dense<0.000000e+00> : vector<2x128xf32>
    %247 = tpu.matmul %245, %246, %cst_83 {dimension_numbers = #tpu.dot_dimension_numbers<[1], [0], [0], [1], [0, 0, 1, 1], [], []>} : vector<2x32xbf16>, vector<32x128xbf16>, vector<2x128xf32> -> vector<2x128xf32>
    %248 = arith.addf %244, %247 : vector<2x128xf32>
    %249 = arith.negf %248 : vector<2x128xf32>
    %250 = math.exp %249 : vector<2x128xf32>
    %cst_84 = arith.constant 1.000000e+00 : f32
    %251 = vector.broadcast %cst_84 : f32 to vector<2x128xf32>
    %252 = arith.addf %251, %250 : vector<2x128xf32>
    %253 = arith.divf %251, %252 : vector<2x128xf32>
    %254 = vector.extract_strided_slice %253 {offsets = [0, 0], sizes = [2, 32], strides = [1, 1]} : vector<2x128xf32> to vector<2x32xf32>
    %255 = vector.extract_strided_slice %253 {offsets = [0, 32], sizes = [2, 32], strides = [1, 1]} : vector<2x128xf32> to vector<2x32xf32>
    %256 = vector.extract_strided_slice %253 {offsets = [0, 64], sizes = [2, 32], strides = [1, 1]} : vector<2x128xf32> to vector<2x32xf32>
    %cst_85 = arith.constant 2.000000e+00 : f32
    %257 = vector.broadcast %cst_85 : f32 to vector<2x32xf32>
    %258 = arith.mulf %257, %256 : vector<2x32xf32>
    %cst_86 = arith.constant 1.000000e+00 : f32
    %259 = vector.broadcast %cst_86 : f32 to vector<2x32xf32>
    %260 = arith.subf %258, %259 : vector<2x32xf32>
    %261 = vector.extract_strided_slice %253 {offsets = [0, 96], sizes = [2, 32], strides = [1, 1]} : vector<2x128xf32> to vector<2x32xf32>
    %262 = arith.mulf %255, %231 : vector<2x32xf32>
    %263 = arith.mulf %254, %260 : vector<2x32xf32>
    %264 = arith.addf %262, %263 : vector<2x32xf32>
    %265 = math.tanh %264 : vector<2x32xf32>
    %266 = arith.mulf %261, %265 : vector<2x32xf32>
    %267 = arith.truncf %266 : vector<2x32xf32> to vector<2x32xbf16>
    %c0_87 = arith.constant 0 : index
    %c0_88 = arith.constant 0 : index
    %268 = vector.load %arg4[%c0_87, %c0_88] : memref<32x128xbf16, #tpu.memory_space<vmem>>, vector<32x128xbf16>
    %cst_89 = arith.constant dense<0.000000e+00> : vector<2x128xf32>
    %269 = tpu.matmul %267, %268, %cst_89 {dimension_numbers = #tpu.dot_dimension_numbers<[1], [0], [0], [1], [0, 0, 1, 1], [], []>} : vector<2x32xbf16>, vector<32x128xbf16>, vector<2x128xf32> -> vector<2x128xf32>
    %c0_90 = arith.constant 0 : index
    %c0_91 = arith.constant 0 : index
    %270 = vector.load %arg5[%c0_90, %c0_91] : memref<1x128xf32, #tpu.memory_space<vmem>>, vector<1x128xf32>
    %271 = vector.broadcast %270 : vector<1x128xf32> to vector<2x128xf32>
    %272 = arith.addf %269, %271 : vector<2x128xf32>
    %c0_92 = arith.constant 0 : index
    %c0_93 = arith.constant 0 : index
    %273 = vector.load %arg6[%c0_92, %c0_93] : memref<2x128xf32, #tpu.memory_space<vmem>>, vector<2x128xf32>
    tpu.vector_store %arg6[%c0_92, %c0_93], %272 {strides = array<i32>} : memref<2x128xf32, #tpu.memory_space<vmem>>, vector<2x128xf32>,
    return
  }
  func.func @transform_0(%arg0: i32, %arg1: memref<2x8xi32, #tpu.memory_space<smem>>) -> (i32, i32) {
    %c0_i32 = arith.constant 0 : i32
    %c0_i32_0 = arith.constant 0 : i32
    %c0_i32_1 = arith.constant 0 : i32
    return %c0_i32, %c0_i32_0 : i32, i32
  }
  func.func @transform_1(%arg0: i32, %arg1: memref<2x8xi32, #tpu.memory_space<smem>>) -> (i32, i32) {
    %c0_i32 = arith.constant 0 : i32
    %c0_i32_0 = arith.constant 0 : i32
    %c0_i32_1 = arith.constant 0 : i32
    return %c0_i32, %c0_i32_0 : i32, i32
  }
  func.func @transform_2(%arg0: i32, %arg1: memref<2x8xi32, #tpu.memory_space<smem>>) -> (i32, i32) {
    %c0_i32 = arith.constant 0 : i32
    %c0_i32_0 = arith.constant 0 : i32
    %c0_i32_1 = arith.constant 0 : i32
    return %c0_i32, %c0_i32_0 : i32, i32
  }
  func.func @transform_3(%arg0: i32, %arg1: memref<2x8xi32, #tpu.memory_space<smem>>) -> (i32, i32) {
    %c0_i32 = arith.constant 0 : i32
    %c0_i32_0 = arith.constant 0 : i32
    %c0_i32_1 = arith.constant 0 : i32
    return %c0_i32, %c0_i32_0 : i32, i32
  }
  func.func @transform_4(%arg0: i32, %arg1: memref<2x8xi32, #tpu.memory_space<smem>>) -> (i32, i32) {
    %c0_i32 = arith.constant 0 : i32
    %c0_i32_0 = arith.constant 0 : i32
    return %arg0, %c0_i32 : i32, i32
  }
}

</mosaic_0001>

<bundles_post_ra>
// kernel: encoder_lstm_forward.1
= control target key start
LH: loop header
LB: loop body
LE: loop exit
PB: predicated region body
PF: predicated region fallthrough
CT: control target
= control target key end

     0   :  { %s1168_s18 = smov [#allocation3]   ;;  %s1337_s0 = inlined_call_operand.hbm [shape: s32[2,8], index: 0, kind: input, shape index: {}]   ;;  %s1338_s1 = inlined_call_operand.hbm [shape: f32[20,128], index: 1, kind: input, shape index: {}]   ;;  %s1339_s2 = inlined_call_operand.hbm [shape: bf16[32,128], index: 2, kind: input, shape index: {}]   ;;  %s1340_s3 = inlined_call_operand.hbm [shape: bf16[32,128], index: 3, kind: input, shape index: {}]   ;;  %s1341_s4 = inlined_call_operand.vmem [shape: f32[1,128], index: 4, kind: input, shape index: {}]   ;;  %s1342_s5 = inlined_call_operand.hbm [shape: f32[2,128], index: 5, kind: output, shape index: {}]  }
   0x1   :  { %11 = dma.hbm_to_smem %s1337_s0, 32, %s1168_s18, [#allocation2] }
   0x2   :  { %1160 = dma.done.wait [#allocation2], 32 }
   0x3   :  { %1161 = vsyncadd [#allocation2], 4294967264 }
   0x4   :  { %13 = sfence }
   0x5   :  { %14 = vsyncpa [#allocation5], 0 }
   0x6   :  { %15 = vsyncpa [#allocation8], 0 }
   0x7   :  { %16 = vsyncpa [#allocation6], 0  ;;  %s1169_s21 = smov [#allocation7]  }
   0x8   :  { %s34_s22 = sshll.u32 %s1169_s21, 4  ;;  %s35_s22 = int_to_ptr.vmem [resolvable:$true] %s34_s22 }
   0x9   :  { %s1088_s23 = scalar_lea.vmem %s35_s22, 256  ;;  %p1093_p1 = scmp.lt.s32.totalorder %s35_s22, %s35_s22 }
   0xa   :  { %p1089_p0 = scmp.ne.s32.totalorder %s35_s22, %s1088_s23  ;;  %p1094_p2 = scmp.lt.s32.totalorder %s1088_s23, %s1088_s23 }
   0xc   :  { %p1095_p3 = por %p1094_p2, %p1093_p1 }
   0xe   :  { %p1096_p4 = pnand %p1095_p3, %p1089_p0 }
  0x10   :  { %1099 = shalt.err (!%p1096_p4)
}
  0x11   :  { %s1170_s24 = smov 64   ;;  %s1171_s25 = smov 4  }
  0x12   :  { %40 = dma.hbm_to_vmem [thread:$0]  %s1339_s2, 256, %s35_s22, [#allocation8], %s1170_s24, %s1170_s24, %s1171_s25  }
  0x13   :  { %s1172_s27 = smov [#allocation4]  }
  0x14   :  { %s22_s28 = sshll.u32 %s1172_s27, 4  ;;  %s23_s28 = int_to_ptr.vmem [resolvable:$true] %s22_s28 }
  0x15   :  { %s1108_s29 = scalar_lea.vmem %s23_s28, 384  ;;  %p1113_p6 = scmp.lt.s32.totalorder %s23_s28, %s23_s28 }
  0x16   :  { %p1109_p5 = scmp.ne.s32.totalorder %s23_s28, %s1108_s29  ;;  %p1114_p7 = scmp.lt.s32.totalorder %s1108_s29, %s1108_s29 }
  0x18   :  { %p1115_p8 = por %p1114_p7, %p1113_p6 }
  0x1a   :  { %p1116_p9 = pnand %p1115_p8, %p1109_p5 }
  0x1c   :  { %1119 = shalt.err (!%p1116_p9)
}
  0x1d   :  { %s1173_s30 = smov 128   ;;  %s1174_s6 = smov 8  }
  0x1e   :  { %28 = dma.hbm_to_vmem [thread:$0]  %s1338_s1, 384, %s23_s28, [#allocation5], %s1173_s30, %s1173_s30, %s1174_s6  }
  0x1f   :  { %s1175_s9 = smov [#allocation9]  }
  0x20   :  { %s46_s10 = sshll.u32 %s1175_s9, 4  ;;  %s47_s10 = int_to_ptr.vmem [resolvable:$true] %s46_s10 }
  0x21   :  { %s1128_s2 = scalar_lea.vmem %s47_s10, 256  ;;  %p1133_p11 = scmp.lt.s32.totalorder %s47_s10, %s47_s10 }
  0x22   :  { %p1129_p10 = scmp.ne.s32.totalorder %s47_s10, %s1128_s2  ;;  %p1134_p12 = scmp.lt.s32.totalorder %s1128_s2, %s1128_s2 }
  0x24   :  { %p1135_p13 = por %p1134_p12, %p1133_p11 }
  0x26   :  { %p1136_p0 = pnand %p1135_p13, %p1129_p10 }
  0x28   :  { %1139 = shalt.err (!%p1136_p0)
}
  0x29   :  { %52 = dma.hbm_to_vmem [thread:$0]  %s1340_s3, 256, %s47_s10, [#allocation8], %s1170_s24, %s1170_s24, %s1171_s25  }
  0x2a   :  { %1162 = dma.done.wait [#allocation5], 384  }
  0x2b   :  { %1163 = vsyncadd [#allocation5], 4294966912 }
  0x2c   :  { %1164 = dma.done.wait [#allocation8], 512  }
  0x2d   :  { %1165 = vsyncadd [#allocation8], 4294966784  ;;  %v1176_v0 = vmov 0.0   ;;  %vm1177_vm0 = vmmov 0   ;;  %v1233_v1 = vld [vmem:[#allocation7 + $0x8] sm:$0xff]   ;;  %v1236_v2 = vld [vmem:[#allocation7] sm:$0xff]  }
  0x2e   :  { %935 = vmatprep.subr.bf16.mxu0 %v1176_v0  ;;  %939 = vmatprep.mubr.msk.bf16.mxu0 %vm1177_vm0, %v1176_v0  ;;  %v1178_v3 = vmov 0   ;;  %s864_s1 = sld [smem:[#allocation3 + $0x80]]  ;;  %vm78_vm1 = vcmask 1040384   ;;  %s1179_s15 = smov 32   ;;  %vm96_vm2 = vcmask 261120  }
  0x2f   :  { %943 = vmatprep.subr.bf16.mxu1 %v1176_v0  ;;  %947 = vmatprep.mubr.msk.bf16.mxu1 %vm1177_vm0, %v1176_v0  ;;  %s67_s3 = sld [smem:[#allocation3]] }
  0x30   :  { %936 = vmatpush3.bf16.msra.mxu0 %v1233_v1  ;;  %944 = vmatpush3.bf16.msra.mxu1 %v1233_v1  ;;  %s870_s16 = sld [smem:[#allocation3 + $0x81]] }
  0x31   :  { %937 = vmatprep.subr.bf16.mxu0 %v1176_v0  ;;  %945 = vmatprep.subr.bf16.mxu1 %v1176_v0  ;;  %s869_s17 = sld [smem:[#allocation3 + $0x1]] }
  0x32   :  { %s875_s20 = sld [smem:[#allocation3 + $0x82]] }
  0x33   :  { %s874_s21 = sld [smem:[#allocation3 + $0x2]] }
  0x34   :  { %938 = vmatpush3.bf16.msra.mxu0 %v1236_v2  ;;  %946 = vmatpush3.bf16.msra.mxu1 %v1236_v2  ;;  %s73_s13 = scalar_lea.vmem [#allocation4], %s864_s1  ;;  %s880_s25 = sld [smem:[#allocation3 + $0x83]] }
  0x35   :  { %951 = vmatprep.subr.bf16.mxu0 %v1176_v0  ;;  %959 = vmatprep.subr.bf16.mxu1 %v1176_v0  ;;  %v74_v4 = vld [vmem:[%s73_s13] sm:$0x1]  ;;  %s68_s14 = scalar_lea.vmem [#allocation4], %s67_s3  ;;  %s879_s0 = sld [smem:[#allocation3 + $0x3]] }
  0x36   :  { %v76_v5 = vrot.slane %v74_v4, 7  ;;  %v69_v6 = vld [vmem:[%s68_s14] sm:$0x1]  ;;  %s172_s18 = scalar_lea.vmem [#allocation4], %s870_s16  ;;  %s885_s28 = sld [smem:[#allocation3 + $0x84]] }
  0x37   :  { %940 = vmatmul.mubr.bf16.vlgmr.msra.gmra.mxu0 %v1178_v3  ;;  %v173_v29 = vld [vmem:[%s172_s18] sm:$0x1]  ;;  %s168_s19 = scalar_lea.vmem [#allocation4], %s869_s17  ;;  %s884_s29 = sld [smem:[#allocation3 + $0x4]] }
  0x38   :  { %952 = vmatpush3.bf16.msra.mxu0 %v1233_v1  ;;  %955 = vmatprep.mubr.msk.bf16.mxu0 %vm1177_vm0, %v1176_v0  ;;  %v79_v7 = vsel %vm78_vm1, %v69_v6, %v76_v5  ;;  %v175_v30 = vrot.slane %v173_v29, 7  ;;  %v169_v31 = vld [vmem:[%s168_s19] sm:$0x1]  ;;  %s257_s22 = scalar_lea.vmem [#allocation4], %s875_s20  ;;  %s890_s7 = sld [smem:[#allocation3 + $0x85]] }
  0x39   :  { %953 = vmatprep.subr.bf16.mxu0 %v1176_v0  ;;  %v258_v54 = vld [vmem:[%s257_s22] sm:$0x1]  ;;  %s253_s23 = scalar_lea.vmem [#allocation4], %s874_s21  ;;  %s889_s8 = sld [smem:[#allocation3 + $0x5]] }
  0x3a   :  { %v177_v32 = vsel %vm78_vm1, %v169_v31, %v175_v30  ;;  %v260_v55 = vrot.slane %v258_v54, 7  ;;  %v254_v56 = vld [vmem:[%s253_s23] sm:$0x1]  ;;  %s342_s26 = scalar_lea.vmem [#allocation4], %s880_s25  ;;  %s895_s2 = sld [smem:[#allocation3 + $0x86]] }
  0x3b   :  { %s338_s27 = scalar_lea.vmem [#allocation4], %s879_s0  ;;  %s894_s11 = sld [smem:[#allocation3 + $0x6]] }
  0x3c   :  { %954 = vmatpush3.bf16.msra.mxu0 %v1236_v2  ;;  %v262_v57 = vsel %vm78_vm1, %v254_v56, %v260_v55  ;;  %s427_s30 = scalar_lea.vmem [#allocation4], %s885_s28  ;;  %s900_s3 = sld [smem:[#allocation3 + $0x87]] }
  0x3d   :  { %967 = vmatprep.subr.bf16.mxu0 %v1176_v0  ;;  %s423_s6 = scalar_lea.vmem [#allocation4], %s884_s29  ;;  %s899_s13 = sld [smem:[#allocation3 + $0x7]] }
  0x3e   :  { %s512_s9 = scalar_lea.vmem [#allocation4], %s890_s7  ;;  %s1180_s19 = smov [#allocation10]  }
  0x3f   :  { %s508_s10 = scalar_lea.vmem [#allocation4], %s889_s8  ;;  %s838_s20 = sshll.u32 %s1180_s19, 4  ;;  %s839_s20 = int_to_ptr.vmem [resolvable:$true] %s838_s20 }
  0x40   :  { %s597_s12 = scalar_lea.vmem [#allocation4], %s895_s2  ;;  %p1145_p2 = scmp.lt.s32.totalorder %s839_s20, %s839_s20 }
  0x41   :  { %s593_s1 = scalar_lea.vmem [#allocation4], %s894_s11 }
  0x42   :  { %s682_s14 = scalar_lea.vmem [#allocation4], %s900_s3 }
  0x43   :  { %s678_s16 = scalar_lea.vmem [#allocation4], %s899_s13 }
  0xf7   :  { %v134_v8 = vpop.f32.mrf.mxu0 }
  0xf8   :  { %v140_v9 = vadd.f32 %v134_v8, %v79_v7 }
  0xf9   :  { %v941_v10 = vpop.f32.mrf.mxu0 }
  0xfa   :  { %v867_v11 = vmul.f32 -1.442695, %v140_v9 }
  0xfb   :  { %v137_v12 = vpop.f32.mrf.mxu0 }
  0xfc   :  { %1024 = vpow2.f32 %v867_v11 }
  0xfd   :  { %v942_v13 = vpop.f32.mrf.mxu0 }
 0x109   :  { %v1025_v14 = vpop.eup %1024 }
 0x10a   :  { %v144_v15 = vadd.f32 1.0, %v1025_v14 }
 0x10c   :  { %1026 = vrcp.f32 %v144_v15 }
 0x119   :  { %v1027_v16 = vpop.eup %1026 }
 0x11a   :  { %v147_v17 = vmul.f32 2.0, %v1027_v16  ;;  %v149_v21 = vmul.f32 0.0, %v1027_v16 }
 0x11c   :  { %v868_v18 = vadd.f32 -1.0, %v147_v17 }
 0x11e   :  { %151 = vrot.lane.b32.xlu0 %v868_v18, %s1170_s24  ;;  %v343_v18 = vld [vmem:[%s342_s26] sm:$0x1] }
 0x190   :  { %v152_v19 = vpop.permute.xlu0 %151 }
 0x191   :  { %v154_v20 = vmul.f32 %v1027_v16, %v152_v19  ;;  %v345_v19 = vrot.slane %v343_v18, 7 }
 0x193   :  { %156 = vrot.lane.b32.xlu0 %v154_v20, %s1179_s15  ;;  %v339_v20 = vld [vmem:[%s338_s27] sm:$0x1] }
 0x205   :  { %v157_v22 = vpop.permute.xlu0 %156 }
 0x206   :  { %v159_v23 = vadd.f32 %v157_v22, %v149_v21  ;;  %v347_v21 = vsel %vm78_vm1, %v339_v20, %v345_v19 }
 0x208   :  { %1028 = vtanh.f32 %v159_v23 }
 0x215   :  { %v1029_v24 = vpop.eup %1028 }
 0x216   :  { %162 = vrot.lane.b32.xlu1 %v1029_v24, %s1170_s24 }
 0x288   :  { %v163_v25 = vpop.permute.xlu1 %162 }
 0x289   :  { %v165_v26 = vmul.f32 %v1027_v16, %v163_v25 }
 0x28b   :  { %v178_v27 = vpack.c.bf16 %v165_v26, %v165_v26 }
 0x28d   :  { %180 = vrot.lane.b32.xlu1 %v178_v27, %s1179_s15 }
 0x2ff   :  { %v181_v28 = vpop.permute.xlu1 %180 }
 0x300   :  { %948 = vmatmul.mubr.msk.bf16.vlgmr.msra.gmra.mxu1 %vm96_vm2, %v181_v28 }
 0x301   :  { %960 = vmatpush3.bf16.msra.mxu1 %v1233_v1  ;;  %963 = vmatprep.mubr.msk.bf16.mxu1 %vm1177_vm0, %v1176_v0 }
 0x302   :  { %961 = vmatprep.subr.bf16.mxu1 %v1176_v0 }
 0x305   :  { %962 = vmatpush3.bf16.msra.mxu1 %v1236_v2 }
 0x306   :  { %975 = vmatprep.subr.bf16.mxu1 %v1176_v0 }
 0x3c0   :  { %v219_v33 = vpop.f32.mrf.mxu1 }
 0x3c1   :  { %v225_v34 = vadd.f32 %v219_v33, %v177_v32 }
 0x3c2   :  { %v949_v35 = vpop.f32.mrf.mxu1 }
 0x3c3   :  { %v872_v36 = vmul.f32 -1.442695, %v225_v34 }
 0x3c4   :  { %v222_v37 = vpop.f32.mrf.mxu1 }
 0x3c5   :  { %1030 = vpow2.f32 %v872_v36 }
 0x3c6   :  { %v950_v38 = vpop.f32.mrf.mxu1 }
 0x3d2   :  { %v1031_v39 = vpop.eup %1030 }
 0x3d3   :  { %v229_v40 = vadd.f32 1.0, %v1031_v39 }
 0x3d5   :  { %1032 = vrcp.f32 %v229_v40 }
 0x3e2   :  { %v1033_v41 = vpop.eup %1032 }
 0x3e3   :  { %v232_v42 = vmul.f32 2.0, %v1033_v41  ;;  %v234_v46 = vmul.f32 %v1033_v41, %v159_v23 }
 0x3e5   :  { %v873_v43 = vadd.f32 -1.0, %v232_v42 }
 0x3e7   :  { %236 = vrot.lane.b32.xlu0 %v873_v43, %s1170_s24  ;;  %v428_v43 = vld [vmem:[%s427_s30] sm:$0x1] }
 0x459   :  { %v237_v44 = vpop.permute.xlu0 %236 }
 0x45a   :  { %v239_v45 = vmul.f32 %v1033_v41, %v237_v44  ;;  %v430_v44 = vrot.slane %v428_v43, 7 }
 0x45c   :  { %241 = vrot.lane.b32.xlu1 %v239_v45, %s1179_s15  ;;  %v424_v45 = vld [vmem:[%s423_s6] sm:$0x1] }
 0x4ce   :  { %v242_v47 = vpop.permute.xlu1 %241 }
 0x4cf   :  { %v244_v48 = vadd.f32 %v242_v47, %v234_v46  ;;  %v432_v46 = vsel %vm78_vm1, %v424_v45, %v430_v44 }
 0x4d1   :  { %1034 = vtanh.f32 %v244_v48 }
 0x4de   :  { %v1035_v49 = vpop.eup %1034 }
 0x4df   :  { %247 = vrot.lane.b32.xlu0 %v1035_v49, %s1170_s24 }
 0x551   :  { %v248_v50 = vpop.permute.xlu0 %247 }
 0x552   :  { %v250_v51 = vmul.f32 %v1033_v41, %v248_v50 }
 0x554   :  { %v263_v52 = vpack.c.bf16 %v250_v51, %v250_v51 }
 0x556   :  { %265 = vrot.lane.b32.xlu1 %v263_v52, %s1179_s15 }
 0x5c8   :  { %v266_v53 = vpop.permute.xlu1 %265 }
 0x5c9   :  { %956 = vmatmul.mubr.msk.bf16.vlgmr.msra.gmra.mxu0 %vm96_vm2, %v266_v53 }
 0x5ca   :  { %968 = vmatpush3.bf16.msra.mxu0 %v1233_v1  ;;  %971 = vmatprep.mubr.msk.bf16.mxu0 %vm1177_vm0, %v1176_v0 }
 0x5cb   :  { %969 = vmatprep.subr.bf16.mxu0 %v1176_v0 }
 0x5ce   :  { %970 = vmatpush3.bf16.msra.mxu0 %v1236_v2 }
 0x5cf   :  { %983 = vmatprep.subr.bf16.mxu0 %v1176_v0 }
 0x689   :  { %v304_v58 = vpop.f32.mrf.mxu0 }
 0x68a   :  { %v310_v59 = vadd.f32 %v304_v58, %v262_v57 }
 0x68b   :  { %v957_v60 = vpop.f32.mrf.mxu0 }
 0x68c   :  { %v877_v61 = vmul.f32 -1.442695, %v310_v59 }
 0x68d   :  { %v307_v62 = vpop.f32.mrf.mxu0 }
 0x68e   :  { %1036 = vpow2.f32 %v877_v61 }
 0x68f   :  { %v958_v63 = vpop.f32.mrf.mxu0 }
 0x69b   :  { %v1037_v3 = vpop.eup %1036 }
 0x69c   :  { %v314_v4 = vadd.f32 1.0, %v1037_v3 }
 0x69e   :  { %1038 = vrcp.f32 %v314_v4 }
 0x6ab   :  { %v1039_v5 = vpop.eup %1038 }
 0x6ac   :  { %v317_v6 = vmul.f32 2.0, %v1039_v5  ;;  %v319_v10 = vmul.f32 %v1039_v5, %v244_v48 }
 0x6ae   :  { %v878_v7 = vadd.f32 -1.0, %v317_v6 }
 0x6b0   :  { %321 = vrot.lane.b32.xlu0 %v878_v7, %s1170_s24  ;;  %v513_v7 = vld [vmem:[%s512_s9] sm:$0x1] }
 0x722   :  { %v322_v8 = vpop.permute.xlu0 %321 }
 0x723   :  { %v324_v9 = vmul.f32 %v1039_v5, %v322_v8  ;;  %v515_v8 = vrot.slane %v513_v7, 7 }
 0x725   :  { %326 = vrot.lane.b32.xlu1 %v324_v9, %s1179_s15  ;;  %v509_v9 = vld [vmem:[%s508_s10] sm:$0x1] }
 0x797   :  { %v327_v11 = vpop.permute.xlu1 %326 }
 0x798   :  { %v329_v12 = vadd.f32 %v327_v11, %v319_v10  ;;  %v517_v10 = vsel %vm78_vm1, %v509_v9, %v515_v8 }
 0x79a   :  { %1040 = vtanh.f32 %v329_v12 }
 0x7a7   :  { %v1041_v13 = vpop.eup %1040 }
 0x7a8   :  { %332 = vrot.lane.b32.xlu0 %v1041_v13, %s1170_s24 }
 0x81a   :  { %v333_v14 = vpop.permute.xlu0 %332 }
 0x81b   :  { %v335_v15 = vmul.f32 %v1039_v5, %v333_v14 }
 0x81d   :  { %v348_v16 = vpack.c.bf16 %v335_v15, %v335_v15 }
 0x81f   :  { %350 = vrot.lane.b32.xlu1 %v348_v16, %s1179_s15 }
 0x891   :  { %v351_v17 = vpop.permute.xlu1 %350 }
 0x892   :  { %964 = vmatmul.mubr.msk.bf16.vlgmr.msra.gmra.mxu1 %vm96_vm2, %v351_v17 }
 0x893   :  { %976 = vmatpush3.bf16.msra.mxu1 %v1233_v1  ;;  %979 = vmatprep.mubr.msk.bf16.mxu1 %vm1177_vm0, %v1176_v0 }
 0x894   :  { %977 = vmatprep.subr.bf16.mxu1 %v1176_v0 }
 0x897   :  { %978 = vmatpush3.bf16.msra.mxu1 %v1236_v2 }
 0x898   :  { %991 = vmatprep.subr.bf16.mxu1 %v1176_v0 }
 0x952   :  { %v389_v22 = vpop.f32.mrf.mxu1 }
 0x953   :  { %v395_v23 = vadd.f32 %v389_v22, %v347_v21 }
 0x954   :  { %v965_v24 = vpop.f32.mrf.mxu1 }
 0x955   :  { %v882_v25 = vmul.f32 -1.442695, %v395_v23 }
 0x956   :  { %v392_v26 = vpop.f32.mrf.mxu1 }
 0x957   :  { %1042 = vpow2.f32 %v882_v25 }
 0x958   :  { %v966_v27 = vpop.f32.mrf.mxu1 }
 0x964   :  { %v1043_v28 = vpop.eup %1042 }
 0x965   :  { %v399_v29 = vadd.f32 1.0, %v1043_v28 }
 0x967   :  { %1044 = vrcp.f32 %v399_v29 }
 0x974   :  { %v1045_v30 = vpop.eup %1044 }
 0x975   :  { %v402_v31 = vmul.f32 2.0, %v1045_v30  ;;  %v404_v35 = vmul.f32 %v1045_v30, %v329_v12 }
 0x977   :  { %v883_v32 = vadd.f32 -1.0, %v402_v31 }
 0x979   :  { %406 = vrot.lane.b32.xlu0 %v883_v32, %s1170_s24  ;;  %v594_v32 = vld [vmem:[%s593_s1] sm:$0x1] }
 0x9eb   :  { %v407_v33 = vpop.permute.xlu0 %406 }
 0x9ec   :  { %v409_v34 = vmul.f32 %v1045_v30, %v407_v33 }
 0x9ee   :  { %411 = vrot.lane.b32.xlu1 %v409_v34, %s1179_s15 }
 0xa60   :  { %v412_v36 = vpop.permute.xlu1 %411 }
 0xa61   :  { %v414_v37 = vadd.f32 %v412_v36, %v404_v35 }
 0xa63   :  { %1046 = vtanh.f32 %v414_v37 }
 0xa70   :  { %v1047_v38 = vpop.eup %1046 }
 0xa71   :  { %417 = vrot.lane.b32.xlu0 %v1047_v38, %s1170_s24 }
 0xae3   :  { %v418_v39 = vpop.permute.xlu0 %417 }
 0xae4   :  { %v420_v40 = vmul.f32 %v1045_v30, %v418_v39  ;;  %v598_v30 = vld [vmem:[%s597_s12] sm:$0x1] }
 0xae5   :  { %v600_v31 = vrot.slane %v598_v30, 7 }
 0xae6   :  { %v433_v41 = vpack.c.bf16 %v420_v40, %v420_v40 }
 0xae7   :  { %v602_v33 = vsel %vm78_vm1, %v594_v32, %v600_v31 }
 0xae8   :  { %435 = vrot.lane.b32.xlu1 %v433_v41, %s1179_s15 }
 0xb5a   :  { %v436_v42 = vpop.permute.xlu1 %435 }
 0xb5b   :  { %972 = vmatmul.mubr.msk.bf16.vlgmr.msra.gmra.mxu0 %vm96_vm2, %v436_v42 }
 0xb5c   :  { %984 = vmatpush3.bf16.msra.mxu0 %v1233_v1  ;;  %987 = vmatprep.mubr.msk.bf16.mxu0 %vm1177_vm0, %v1176_v0 }
 0xb5d   :  { %985 = vmatprep.subr.bf16.mxu0 %v1176_v0 }
 0xb60   :  { %986 = vmatpush3.bf16.msra.mxu0 %v1236_v2 }
 0xb61   :  { %999 = vmatprep.subr.bf16.mxu0 %v1176_v0 }
 0xc1b   :  { %v474_v47 = vpop.f32.mrf.mxu0 }
 0xc1c   :  { %v480_v48 = vadd.f32 %v474_v47, %v432_v46 }
 0xc1d   :  { %v973_v49 = vpop.f32.mrf.mxu0 }
 0xc1e   :  { %v887_v50 = vmul.f32 -1.442695, %v480_v48 }
 0xc1f   :  { %v477_v51 = vpop.f32.mrf.mxu0 }
 0xc20   :  { %1048 = vpow2.f32 %v887_v50 }
 0xc21   :  { %v974_v52 = vpop.f32.mrf.mxu0 }
 0xc2d   :  { %v1049_v53 = vpop.eup %1048 }
 0xc2e   :  { %v484_v54 = vadd.f32 1.0, %v1049_v53 }
 0xc30   :  { %1050 = vrcp.f32 %v484_v54 }
 0xc3d   :  { %v1051_v55 = vpop.eup %1050 }
 0xc3e   :  { %v487_v56 = vmul.f32 2.0, %v1051_v55  ;;  %v489_v60 = vmul.f32 %v1051_v55, %v414_v37 }
 0xc40   :  { %v888_v57 = vadd.f32 -1.0, %v487_v56 }
 0xc42   :  { %491 = vrot.lane.b32.xlu0 %v888_v57, %s1170_s24  ;;  %v679_v57 = vld [vmem:[%s678_s16] sm:$0x1] }
 0xcb4   :  { %v492_v58 = vpop.permute.xlu0 %491 }
 0xcb5   :  { %v494_v59 = vmul.f32 %v1051_v55, %v492_v58 }
 0xcb7   :  { %496 = vrot.lane.b32.xlu1 %v494_v59, %s1179_s15 }
 0xd29   :  { %v497_v61 = vpop.permute.xlu1 %496 }
 0xd2a   :  { %v499_v62 = vadd.f32 %v497_v61, %v489_v60 }
 0xd2c   :  { %1052 = vtanh.f32 %v499_v62 }
 0xd39   :  { %v1053_v63 = vpop.eup %1052 }
 0xd3a   :  { %502 = vrot.lane.b32.xlu0 %v1053_v63, %s1170_s24 }
 0xdac   :  { %v503_v3 = vpop.permute.xlu0 %502 }
 0xdad   :  { %v505_v4 = vmul.f32 %v1051_v55, %v503_v3  ;;  %v683_v55 = vld [vmem:[%s682_s14] sm:$0x1] }
 0xdae   :  { %v685_v56 = vrot.slane %v683_v55, 7 }
 0xdaf   :  { %v518_v5 = vpack.c.bf16 %v505_v4, %v505_v4 }
 0xdb0   :  { %v687_v58 = vsel %vm78_vm1, %v679_v57, %v685_v56 }
 0xdb1   :  { %520 = vrot.lane.b32.xlu1 %v518_v5, %s1179_s15 }
 0xe23   :  { %v521_v6 = vpop.permute.xlu1 %520 }
 0xe24   :  { %980 = vmatmul.mubr.msk.bf16.vlgmr.msra.gmra.mxu1 %vm96_vm2, %v521_v6 }
 0xe25   :  { %992 = vmatpush3.bf16.msra.mxu1 %v1233_v1  ;;  %995 = vmatprep.mubr.msk.bf16.mxu1 %vm1177_vm0, %v1176_v0 }
 0xe26   :  { %993 = vmatprep.subr.bf16.mxu1 %v1176_v0 }
 0xe29   :  { %994 = vmatpush3.bf16.msra.mxu1 %v1236_v2 }
 0xee4   :  { %v559_v11 = vpop.f32.mrf.mxu1 }
 0xee5   :  { %v565_v12 = vadd.f32 %v559_v11, %v517_v10 }
 0xee6   :  { %v981_v13 = vpop.f32.mrf.mxu1 }
 0xee7   :  { %v892_v1 = vmul.f32 -1.442695, %v565_v12 }
 0xee8   :  { %v562_v14 = vpop.f32.mrf.mxu1 }
 0xee9   :  { %1054 = vpow2.f32 %v892_v1  ;;  %v1022_v1 = vld [vmem:[#allocation9 + $0x8] sm:$0xff]   ;;  %v1023_v14 = vld [vmem:[#allocation9] sm:$0xff]  }
 0xeea   :  { %v982_v15 = vpop.f32.mrf.mxu1 }
 0xef6   :  { %v1055_v16 = vpop.eup %1054 }
 0xef7   :  { %v569_v17 = vadd.f32 1.0, %v1055_v16 }
 0xef9   :  { %1056 = vrcp.f32 %v569_v17 }
 0xf06   :  { %v1057_v2 = vpop.eup %1056 }
 0xf07   :  { %v572_v18 = vmul.f32 2.0, %v1057_v2  ;;  %v574_v22 = vmul.f32 %v1057_v2, %v499_v62 }
 0xf09   :  { %v893_v19 = vadd.f32 -1.0, %v572_v18 }
 0xf0b   :  { %576 = vrot.lane.b32.xlu0 %v893_v19, %s1170_s24  ;;  %v904_v19 = vld [vmem:[%s1341_s4] ss:$0 sm:$0xff] }
 0xf7d   :  { %v577_v20 = vpop.permute.xlu0 %576 }
 0xf7e   :  { %v579_v21 = vmul.f32 %v1057_v2, %v577_v20 }
 0xf80   :  { %581 = vrot.lane.b32.xlu1 %v579_v21, %s1179_s15 }
 0xff2   :  { %v582_v23 = vpop.permute.xlu1 %581 }
 0xff3   :  { %v584_v24 = vadd.f32 %v582_v23, %v574_v22 }
 0xff5   :  { %1058 = vtanh.f32 %v584_v24 }
0x1002   :  { %v1059_v25 = vpop.eup %1058 }
0x1003   :  { %587 = vrot.lane.b32.xlu0 %v1059_v25, %s1170_s24 }
0x1075   :  { %v588_v26 = vpop.permute.xlu0 %587 }
0x1076   :  { %v590_v27 = vmul.f32 %v1057_v2, %v588_v26 }
0x1078   :  { %v603_v28 = vpack.c.bf16 %v590_v27, %v590_v27 }
0x107a   :  { %605 = vrot.lane.b32.xlu1 %v603_v28, %s1179_s15 }
0x10ec   :  { %v606_v29 = vpop.permute.xlu1 %605 }
0x10ed   :  { %988 = vmatmul.mubr.msk.bf16.vlgmr.msra.gmra.mxu0 %vm96_vm2, %v606_v29 }
0x10ee   :  { %1003 = vmatprep.mubr.msk.bf16.mxu0 %vm1177_vm0, %v1176_v0  ;;  %1000 = vmatpush3.bf16.msra.mxu0 %v1022_v1 }
0x10ef   :  { %1001 = vmatprep.subr.bf16.mxu0 %v1176_v0 }
0x10f2   :  { %1002 = vmatpush3.bf16.msra.mxu0 %v1023_v14 }
0x11ad   :  { %v644_v34 = vpop.f32.mrf.mxu0 }
0x11ae   :  { %v650_v35 = vadd.f32 %v644_v34, %v602_v33 }
0x11af   :  { %v989_v36 = vpop.f32.mrf.mxu0 }
0x11b0   :  { %v897_v37 = vmul.f32 -1.442695, %v650_v35 }
0x11b1   :  { %v647_v38 = vpop.f32.mrf.mxu0 }
0x11b2   :  { %1060 = vpow2.f32 %v897_v37 }
0x11b3   :  { %v990_v39 = vpop.f32.mrf.mxu0 }
0x11bf   :  { %v1061_v40 = vpop.eup %1060 }
0x11c0   :  { %v654_v41 = vadd.f32 1.0, %v1061_v40 }
0x11c2   :  { %1062 = vrcp.f32 %v654_v41 }
0x11cf   :  { %v1063_v42 = vpop.eup %1062 }
0x11d0   :  { %v657_v43 = vmul.f32 2.0, %v1063_v42  ;;  %v659_v47 = vmul.f32 %v1063_v42, %v584_v24 }
0x11d2   :  { %v898_v44 = vadd.f32 -1.0, %v657_v43 }
0x11d4   :  { %661 = vrot.lane.b32.xlu0 %v898_v44, %s1170_s24 }
0x1246   :  { %v662_v45 = vpop.permute.xlu0 %661 }
0x1247   :  { %v664_v46 = vmul.f32 %v1063_v42, %v662_v45 }
0x1249   :  { %666 = vrot.lane.b32.xlu1 %v664_v46, %s1179_s15 }
0x12bb   :  { %v667_v48 = vpop.permute.xlu1 %666 }
0x12bc   :  { %v669_v49 = vadd.f32 %v667_v48, %v659_v47 }
0x12be   :  { %1064 = vtanh.f32 %v669_v49 }
0x12cb   :  { %v1065_v50 = vpop.eup %1064 }
0x12cc   :  { %672 = vrot.lane.b32.xlu0 %v1065_v50, %s1170_s24 }
0x133e   :  { %v673_v51 = vpop.permute.xlu0 %672 }
0x133f   :  { %v675_v52 = vmul.f32 %v1063_v42, %v673_v51 }
0x1341   :  { %v688_v53 = vpack.c.bf16 %v675_v52, %v675_v52 }
0x1343   :  { %690 = vrot.lane.b32.xlu1 %v688_v53, %s1179_s15 }
0x13b5   :  { %v691_v54 = vpop.permute.xlu1 %690 }
0x13b6   :  { %996 = vmatmul.mubr.msk.bf16.vlgmr.msra.gmra.mxu1 %vm96_vm2, %v691_v54 }
0x1476   :  { %v729_v59 = vpop.f32.mrf.mxu1 }
0x1477   :  { %v735_v60 = vadd.f32 %v729_v59, %v687_v58 }
0x1478   :  { %v997_v61 = vpop.f32.mrf.mxu1 }
0x1479   :  { %v902_v62 = vmul.f32 -1.442695, %v735_v60 }
0x147a   :  { %v732_v63 = vpop.f32.mrf.mxu1 }
0x147b   :  { %1066 = vpow2.f32 %v902_v62 }
0x147c   :  { %v998_v3 = vpop.f32.mrf.mxu1 }
0x1488   :  { %v1067_v4 = vpop.eup %1066 }
0x1489   :  { %v739_v5 = vadd.f32 1.0, %v1067_v4 }
0x148b   :  { %1068 = vrcp.f32 %v739_v5 }
0x1498   :  { %v1069_v6 = vpop.eup %1068 }
0x1499   :  { %v742_v7 = vmul.f32 2.0, %v1069_v6  ;;  %v744_v11 = vmul.f32 %v1069_v6, %v669_v49 }
0x149b   :  { %v903_v8 = vadd.f32 -1.0, %v742_v7 }
0x149d   :  { %746 = vrot.lane.b32.xlu0 %v903_v8, %s1170_s24 }
0x150f   :  { %v747_v9 = vpop.permute.xlu0 %746 }
0x1510   :  { %v749_v10 = vmul.f32 %v1069_v6, %v747_v9 }
0x1512   :  { %751 = vrot.lane.b32.xlu1 %v749_v10, %s1179_s15 }
0x1584   :  { %v752_v12 = vpop.permute.xlu1 %751 }
0x1585   :  { %v754_v13 = vadd.f32 %v752_v12, %v744_v11 }
0x1587   :  { %1070 = vtanh.f32 %v754_v13 }
0x1594   :  { %v1071_v15 = vpop.eup %1070 }
0x1595   :  { %757 = vrot.lane.b32.xlu0 %v1071_v15, %s1170_s24  ;;  %s1140_s24 = scalar_lea.vmem %s839_s20, 32 }
0x1596   :  { %p1141_p1 = scmp.ne.s32.totalorder %s839_s20, %s1140_s24  ;;  %p1146_p3 = scmp.lt.s32.totalorder %s1140_s24, %s1140_s24 }
0x1598   :  { %p1147_p4 = por %p1146_p3, %p1145_p2 }
0x159a   :  { %p1148_p5 = pnand %p1147_p4, %p1141_p1 }
0x1607   :  { %v758_v16 = vpop.permute.xlu0 %757 }
0x1608   :  { %v760_v17 = vmul.f32 %v1069_v6, %v758_v16 }
0x160a   :  { %v761_v2 = vpack.c.bf16 %v760_v17, %v760_v17 }
0x160c   :  { %774 = vrot.lane.b32.xlu1 %v761_v2, %s1179_s15 }
0x167e   :  { %v775_v18 = vpop.permute.xlu1 %774 }
0x167f   :  { %1004 = vmatmul.mubr.msk.bf16.vlgmr.msra.gmra.mxu0 %vm96_vm2, %v775_v18 }
0x173f   :  { %v825_v20 = vpop.f32.mrf.mxu0 }
0x1740   :  { %v826_v0 = vadd.f32 %v904_v19, %v825_v20 }
0x1741   :  { %v1005_v21 = vpop.f32.mrf.mxu0 }
0x1742   :  { %831 = vst [vmem:[#allocation10] sm:$0x3] %v826_v0 }
0x1743   :  { %v828_v22 = vpop.f32.mrf.mxu0 }
0x1744   :  { %1151 = shalt.err (!%p1148_p5)
}
0x1745   :  { %841 = dma.vmem_to_hbm [thread:$0]  %s839_s20, 32, %s1342_s5, [#allocation6]   ;;  %v1006_v23 = vpop.f32.mrf.mxu0 }
0x1746   :  { %1166 = dma.done.wait [#allocation6], 32  }
0x1747   :  { %1167 = vsyncadd [#allocation6], 4294967264 }
0x1748   :  { %845 = vsyncpa [#allocation5], 1 }
0x1749   :  { %846 = vsyncpa [#allocation8], 1 }
0x174a   :  { %847 = vsyncpa [#allocation6], 1 }

</bundles_post_ra>
